<compile_context>
chip_gen: v5e
topology: v5e:2x2
jax: 0.10.0
libtpu: 0.0.40
codegen_flags: <defaults>
</compile_context>

<pallas_src>
import functools

import jax
import jax.numpy as jnp
from jax.experimental import pallas as pl
from jax.experimental.pallas import tpu as pltpu


def _cdiv(a, b):
    return -(-a // b)


def _round_up(a, b):
    return _cdiv(a, b) * b


def _moving_avg_kernel(x_ref, o_ref, *, kernel_size, stride, inv_k):
    """x_ref: (1, stride, Q, TL) phase-major padded input tile.
    o_ref:  (TR, TL) pooled output tile.

    Output row i averages padded rows i*stride + j, j in [0, kernel_size), and
    padded[base + i*stride + j] == x_ref[0, j % stride, i + j // stride, :],
    so every load is a contiguous (TR, TL) slice.  Accumulate in f32.
    """
    tr = o_ref.shape[0]
    acc = None
    # TODO(synk): for very large kernel_size a running-sum / log-depth doubling
    # scheme would cut the k row loads per tile; irrelevant while HBM-bound.
    for j in range(kernel_size):
        p, m = j % stride, j // stride
        row = x_ref[0, p, pl.ds(m, tr), :].astype(jnp.float32)
        acc = row if acc is None else acc + row
    o_ref[...] = (acc * inv_k).astype(o_ref.dtype)


def moving_avg_forward(x, kernel_size, stride):
    """Pallas equivalent of the PyTorch moving_avg module.

    x: (B, S, C) -> (B, OUT, C), OUT = (S + 2*((k-1)//2) - k) // stride + 1.
    """
    assert kernel_size >= 1 and stride >= 1
    if not jnp.issubdtype(x.dtype, jnp.floating):
        x = x.astype(jnp.float32)
    dtype = x.dtype
    itemsize = jnp.dtype(dtype).itemsize

    B, S, C = x.shape
    pad = (kernel_size - 1) // 2
    padded_len = S + 2 * pad
    assert padded_len >= kernel_size, "sequence too short for this kernel_size"
    out_len = (padded_len - kernel_size) // stride + 1

    LANE, SUB = 128, 8
    L = B * C
    lane_groups = _cdiv(L, LANE)
    Lp = lane_groups * LANE

    # ---- time (row) tiling: TR output rows per tile, multiple of 8 ----
    max_tr = max(SUB, _round_up(max(1, 512 // stride), SUB))
    n_row_tiles = _cdiv(out_len, max_tr)
    if n_row_tiles == 1 and lane_groups < 2 and out_len >= 2 * SUB:
        n_row_tiles = 2                          # keep both v7x TensorCores busy
    TR = _round_up(_cdiv(out_len, n_row_tiles), SUB)
    n_row_tiles = _cdiv(out_len, TR)
    out_pad = n_row_tiles * TR
    Q = TR + (kernel_size - 1) // stride         # padded rows per phase per tile
    in_rows = stride * Q                         # rows DMA'd per tile

    # ---- lane tiling against a conservative VMEM budget ----
    BUDGET = 10 * 2**20   # 2x(in+out) blocks + f32 temps; fits v5e 16 MiB scoped default
    bytes_per_lane = 2 * (in_rows + TR) * itemsize + 8 * TR
    d_budget = max(1, int(BUDGET // bytes_per_lane) // LANE)
    d_cap = max(1, min(d_budget, lane_groups, 16))            # <= 2048 lanes / tile
    if n_row_tiles == 1 and lane_groups >= 2:
        d_cap = max(1, min(d_cap, lane_groups // 2))          # >= 2 parallel steps
    d = max(dd for dd in range(1, d_cap + 1) if lane_groups % dd == 0)
    tile_l = d * LANE
    n_lane_tiles = lane_groups // d

    # ---- build the padded, phase-major, row-tiled slab in one gather pass ----
    x2d = jnp.transpose(x, (1, 0, 2)).reshape(S, L)           # lane-dense (S, B*C)
    r_idx = jnp.arange(n_row_tiles, dtype=jnp.int32)[:, None, None] * (TR * stride)
    p_idx = jnp.arange(stride, dtype=jnp.int32)[None, :, None]
    q_idx = jnp.arange(Q, dtype=jnp.int32)[None, None, :] * stride
    row_ids = jnp.clip(r_idx + p_idx + q_idx - pad, 0, S - 1)  # replication pad + halo
    x4d = jnp.take(x2d, row_ids, axis=0)                       # (nrt, stride, Q, L)
    if Lp != L:
        x4d = jnp.pad(x4d, ((0, 0), (0, 0), (0, 0), (0, Lp - L)))

    kernel = functools.partial(
        _moving_avg_kernel, kernel_size=kernel_size, stride=stride,
        inv_k=1.0 / float(kernel_size))

    out2d = pl.pallas_call(
        kernel,
        out_shape=jax.ShapeDtypeStruct((out_pad, Lp), dtype),
        grid_spec=pltpu.PrefetchScalarGridSpec(
            num_scalar_prefetch=0,
            grid=(n_row_tiles, n_lane_tiles),
            in_specs=[pl.BlockSpec((1, stride, Q, tile_l),
                                   lambda r, j: (r, 0, 0, j))],
            out_specs=pl.BlockSpec((TR, tile_l), lambda r, j: (r, j)),
        ),
        compiler_params=pltpu.CompilerParams(
            dimension_semantics=("parallel", "parallel"),
            vmem_limit_bytes=32 * 1024 * 1024),
        cost_estimate=pl.CostEstimate(
            flops=out_pad * Lp * kernel_size,
            transcendentals=0,
            bytes_accessed=itemsize * (n_row_tiles * in_rows * Lp + out_pad * Lp)),
    )(x4d)

    out = out2d[:out_len, :L].reshape(out_len, B, C)
    return jnp.transpose(out, (1, 0, 2))                       # (B, out_len, C)


def reference_moving_avg(x, kernel_size, stride):
    """Pure-JAX reference mirroring the PyTorch module."""
    pad = (kernel_size - 1) // 2
    front = jnp.repeat(x[:, :1, :], pad, axis=1)
    end = jnp.repeat(x[:, -1:, :], pad, axis=1)
    xp = jnp.concatenate([front, x, end], axis=1)               # (B, S + 2*pad, C)
    out_len = (xp.shape[1] - kernel_size) // stride + 1
    windows = [xp[:, j * stride:j * stride + kernel_size, :].mean(axis=1)
               for j in range(out_len)]
    return jnp.stack(windows, axis=1)                           # (B, out_len, C)


if __name__ == "__main__":
    B, SEQ_LEN, CHANNELS = 2, 8, 4
    key = jax.random.PRNGKey(0)
    x = jax.random.normal(key, (B, SEQ_LEN, CHANNELS), dtype=jnp.float32)

    # Main configuration used in DLinear: kernel_size=5, stride=1.
    out = jax.block_until_ready(moving_avg_forward(x, kernel_size=5, stride=1))
    ref = reference_moving_avg(x, kernel_size=5, stride=1)
    assert out.shape == ref.shape
    assert jnp.allclose(out, ref, rtol=1e-5, atol=1e-5), "mismatch (k=5, stride=1)"

    # Generality check: different kernel_size / stride (stride folded in-kernel).
    out2 = jax.block_until_ready(moving_avg_forward(x, kernel_size=3, stride=2))
    ref2 = reference_moving_avg(x, kernel_size=3, stride=2)
    assert out2.shape == ref2.shape
    assert jnp.allclose(out2, ref2, rtol=1e-5, atol=1e-5), "mismatch (k=3, stride=2)"

    print("KERNEL_OK")
</pallas_src>

<mosaic_0001>
module attributes {stable_mosaic.version = 11 : i64} {
  func.func @_moving_avg_kernel(%arg0: i32, %arg1: i32, %arg2: memref<1x1x12x128xf32, #tpu.memory_space<vmem>>, %arg3: memref<8x128xf32, #tpu.memory_space<vmem>>) attributes {dimension_semantics = [#tpu.dimension_semantics<parallel>, #tpu.dimension_semantics<parallel>], iteration_bounds = array<i64: 1, 1>, scalar_prefetch = 0 : i64, scratch_operands = 0 : i64, tpu.core_type = #tpu.core_type<tc>, window_params = [{transform_indices = @transform_0, window_bounds = array<i64: 1, 1, 12, 128>}, {transform_indices = @transform_1, window_bounds = array<i64: 8, 128>}]} {
    %c0 = arith.constant 0 : index
    %c0_0 = arith.constant 0 : index
    %c0_1 = arith.constant 0 : index
    %c0_2 = arith.constant 0 : index
    %0 = vector.load %arg2[%c0, %c0_0, %c0_1, %c0_2] : memref<1x1x12x128xf32, #tpu.memory_space<vmem>>, vector<1x1x8x128xf32>
    %1 = vector.shape_cast %0 : vector<1x1x8x128xf32> to vector<8x128xf32>
    %c0_3 = arith.constant 0 : index
    %c0_4 = arith.constant 0 : index
    %c1 = arith.constant 1 : index
    %c0_5 = arith.constant 0 : index
    %2 = vector.load %arg2[%c0_3, %c0_4, %c1, %c0_5] : memref<1x1x12x128xf32, #tpu.memory_space<vmem>>, vector<1x1x8x128xf32>
    %3 = vector.shape_cast %2 : vector<1x1x8x128xf32> to vector<8x128xf32>
    %4 = arith.addf %1, %3 : vector<8x128xf32>
    %c0_6 = arith.constant 0 : index
    %c0_7 = arith.constant 0 : index
    %c2 = arith.constant 2 : index
    %c0_8 = arith.constant 0 : index
    %5 = vector.load %arg2[%c0_6, %c0_7, %c2, %c0_8] : memref<1x1x12x128xf32, #tpu.memory_space<vmem>>, vector<1x1x8x128xf32>
    %6 = vector.shape_cast %5 : vector<1x1x8x128xf32> to vector<8x128xf32>
    %7 = arith.addf %4, %6 : vector<8x128xf32>
    %c0_9 = arith.constant 0 : index
    %c0_10 = arith.constant 0 : index
    %c3 = arith.constant 3 : index
    %c0_11 = arith.constant 0 : index
    %8 = vector.load %arg2[%c0_9, %c0_10, %c3, %c0_11] : memref<1x1x12x128xf32, #tpu.memory_space<vmem>>, vector<1x1x8x128xf32>
    %9 = vector.shape_cast %8 : vector<1x1x8x128xf32> to vector<8x128xf32>
    %10 = arith.addf %7, %9 : vector<8x128xf32>
    %c0_12 = arith.constant 0 : index
    %c0_13 = arith.constant 0 : index
    %c4 = arith.constant 4 : index
    %c0_14 = arith.constant 0 : index
    %11 = vector.load %arg2[%c0_12, %c0_13, %c4, %c0_14] : memref<1x1x12x128xf32, #tpu.memory_space<vmem>>, vector<1x1x8x128xf32>
    %12 = vector.shape_cast %11 : vector<1x1x8x128xf32> to vector<8x128xf32>
    %13 = arith.addf %10, %12 : vector<8x128xf32>
    %cst = arith.constant 2.000000e-01 : f32
    %14 = vector.broadcast %cst : f32 to vector<8x128xf32>
    %15 = arith.mulf %13, %14 : vector<8x128xf32>
    %c0_15 = arith.constant 0 : index
    %c0_16 = arith.constant 0 : index
    %16 = vector.load %arg3[%c0_15, %c0_16] : memref<8x128xf32, #tpu.memory_space<vmem>>, vector<8x128xf32>
    tpu.vector_store %arg3[%c0_15, %c0_16], %15 {strides = array<i32>} : memref<8x128xf32, #tpu.memory_space<vmem>>, vector<8x128xf32>,
    return
  }
  func.func @transform_0(%arg0: i32, %arg1: i32) -> (i32, i32, i32, i32) {
    %c0_i32 = arith.constant 0 : i32
    %c0_i32_0 = arith.constant 0 : i32
    %c0_i32_1 = arith.constant 0 : i32
    return %arg0, %c0_i32, %c0_i32_0, %arg1 : i32, i32, i32, i32
  }
  func.func @transform_1(%arg0: i32, %arg1: i32) -> (i32, i32) {
    %c0_i32 = arith.constant 0 : i32
    return %arg0, %arg1 : i32, i32
  }
}

</mosaic_0001>

<bundles_post_ra>
// kernel: tpu_custom_call.1
= control target key start
LH: loop header
LB: loop body
LE: loop exit
PB: predicated region body
PF: predicated region fallthrough
CT: control target
= control target key end

     0   :  { %s92_s0 = inlined_call_operand.vmem [shape: f32[1,1,12,128], index: 0, kind: input, shape index: {}]   ;;  %s93_s1 = inlined_call_operand.hbm [shape: f32[8,128], index: 1, kind: output, shape index: {}]  }
   0x1   :  { %v9_v0 = vld [vmem:[%s92_s0] sm:$0xff] }
   0x2   :  { %v10_v1 = vld [vmem:[%s92_s0 + $0x1] sm:$0xff] }
   0x3   :  { %v12_v2 = vld [vmem:[%s92_s0 + $0x2] sm:$0xff]  ;;  %v11_v3 = vadd.f32 %v10_v1, %v9_v0 }
   0x4   :  { %6 = vsyncpa [#allocation3], 0  ;;  %v14_v4 = vld [vmem:[%s92_s0 + $0x3] sm:$0xff]  ;;  %s63_s16 = smov [#allocation2]   ;;  %s27_s20 = sshll.u32 %s93_s1, 4  ;;  %s28_s20 = int_to_ptr.hbm [resolvable:$true] %s27_s20 }
   0x5   :  { %v13_v5 = vadd.f32 %v12_v2, %v11_v3  ;;  %v16_v6 = vld [vmem:[%s92_s0 + $0x4] sm:$0xff]  ;;  %s25_s17 = sshll.u32 %s63_s16, 4  ;;  %s26_s17 = int_to_ptr.vmem [resolvable:$true] %s25_s17 }
   0x7   :  { %v15_v7 = vadd.f32 %v14_v4, %v13_v5 }
   0x9   :  { %v17_v8 = vadd.f32 %v16_v6, %v15_v7 }
   0xb   :  { %v18_v9 = vmul.f32 0.2, %v17_v8 }
   0xd   :  { %19 = vst [vmem:[#allocation2] sm:$0xff] %v18_v9 }
   0xe   :  { %30 = dma.vmem_to_hbm [thread:$0]  %s26_s17, 128, %s28_s20, [#allocation3]  }
   0xf   :  { %61 = dma.done.wait [#allocation3], 128  }
  0x10   :  { %62 = vsyncadd [#allocation3], 4294967168 }
  0x11   :  { %35 = vsyncpa [#allocation3], 1 }

</bundles_post_ra>
